<compile_context>
chip_gen: v5e
topology: v5e:2x2
jax: 0.10.0
libtpu: 0.0.40
codegen_flags: <defaults>
</compile_context>

<pallas_src>
import functools

import numpy as np
import jax
import jax.numpy as jnp
from jax.experimental import pallas as pl
from jax.experimental.pallas import tpu as pltpu

_LANE = 128
_SUBLANE_F32 = 8
_SUBLANE_BF16 = 16


def _round_up(x, m):
    return ((x + m - 1) // m) * m


def _vmem_capacity_bytes():
    """Generation-aware VMEM capacity (v5e/v6e: 128 MiB, v7x: 64 MiB)."""
    try:
        info = pltpu.get_tpu_info()
        cap = getattr(info, "vmem_capacity_bytes", None)
        if cap:
            return int(cap)
    except Exception:
        pass
    return 64 * 1024 * 1024  # conservative default (smallest VMEM = v7x)


# --------------------------------------------------------------------------
# Kernels
# --------------------------------------------------------------------------
def _ensemble_linear_kernel_accout(x_ref, w_ref, b_ref, o_ref):
    """f32-output variant: accumulate directly into the VMEM-resident output."""
    # x_ref: (eb, tb, tk)  w_ref: (eb, tk, to)  b_ref: (eb, 1, to)  o_ref: (eb, tb, to)
    k = pl.program_id(3)

    @pl.when(k == 0)
    def _():
        o_ref[...] = jnp.zeros_like(o_ref)

    o_ref[...] += jnp.einsum(
        "ebi,eio->ebo", x_ref[...], w_ref[...],
        preferred_element_type=jnp.float32)

    @pl.when(k == pl.num_programs(3) - 1)
    def _():
        o_ref[...] += b_ref[...]  # bias folded in exactly once


def _ensemble_linear_kernel_scratch(x_ref, w_ref, b_ref, o_ref, acc_ref):
    """Low-precision-output variant: f32 scratch accumulator, cast at finalize."""
    k = pl.program_id(3)

    @pl.when(k == 0)
    def _():
        acc_ref[...] = jnp.zeros_like(acc_ref)

    acc_ref[...] += jnp.einsum(
        "ebi,eio->ebo", x_ref[...], w_ref[...],
        preferred_element_type=jnp.float32)

    @pl.when(k == pl.num_programs(3) - 1)
    def _():
        o_ref[...] = (acc_ref[...] + b_ref[...]).astype(o_ref.dtype)


# --------------------------------------------------------------------------
# Tiling
# --------------------------------------------------------------------------
def _largest_divisor_tile(n, gran, cap):
    """Largest multiple of `gran` that divides `n` and is <= cap (n % gran == 0)."""
    cap = min(n, max(gran, (cap // gran) * gran))
    t = cap
    while t > gran:
        if n % t == 0:
            return t
        t -= gran
    return gran


def _step_vmem_bytes(eb, tb, tk, to, x_bytes, w_bytes, o_bytes, need_scratch):
    s = (2 * eb * tb * tk * x_bytes      # x   (double-buffered)
         + 2 * eb * tk * to * w_bytes    # W   (double-buffered)
         + 2 * eb * to * 4               # bias (f32, double-buffered)
         + 2 * eb * tb * to * o_bytes)   # out (double-buffered)
    if need_scratch:
        s += eb * tb * to * 4            # f32 accumulator scratch
    return s


def _choose_tiles(E, B_pad, I_pad, O_pad, sub,
                  x_bytes, w_bytes, o_bytes, need_scratch, vmem_budget):
    """Pick (eb, tb, tk, to): lane-dense divisors of the padded dims."""
    tb = _largest_divisor_tile(B_pad, sub, min(B_pad, 1024))
    to = _largest_divisor_tile(O_pad, _LANE, min(O_pad, 512))
    tk = _largest_divisor_tile(I_pad, _LANE, min(I_pad, 1024))

    def fits(eb_, tb_, tk_, to_):
        return _step_vmem_bytes(eb_, tb_, tk_, to_, x_bytes, w_bytes,
                                o_bytes, need_scratch) <= vmem_budget

    def shrink(val, gran, n):
        t = val - gran
        while t > gran:
            if n % t == 0:
                return t
            t -= gran
        return gran

    # W is re-streamed ceil(B/tb) times, x is re-streamed ceil(O/to) times.
    # When VMEM is tight, shrink tk first (no HBM cost), then the tile that
    # protects the *smaller* operand, so the bigger tensor streams fewer times.
    w_is_bigger = I_pad * O_pad * w_bytes >= B_pad * I_pad * x_bytes
    while not fits(1, tb, tk, to):
        if tk > _LANE:
            tk = shrink(tk, _LANE, I_pad)
        elif w_is_bigger and to > _LANE:
            to = shrink(to, _LANE, O_pad)       # keep tb large: W streams once
        elif (not w_is_bigger) and tb > sub:
            tb = shrink(tb, sub, B_pad)         # keep to large: x streams once
        elif to > _LANE:
            to = shrink(to, _LANE, O_pad)
        elif tb > sub:
            tb = shrink(tb, sub, B_pad)
        else:
            break  # minimal tiles

    # Pack several ensemble members per grid step when per-member work is tiny,
    # but keep >= 2 units of parallel grid work for a second TensorCore (v7x).
    b_tiles = B_pad // tb
    o_tiles = O_pad // to
    eb = 1
    for cand in range(2, E + 1):
        if 2 * eb * tb * tk * to >= (32 << 20):   # enough work per step already
            break
        if E % cand:
            continue
        if not fits(cand, tb, tk, to):
            break
        if (E // cand) * b_tiles * o_tiles < 2 and E * b_tiles * o_tiles >= 2:
            break
        eb = cand
    return eb, tb, tk, to


# --------------------------------------------------------------------------
# Forward
# --------------------------------------------------------------------------
@functools.partial(jax.jit, static_argnames=("O", "use_bf16"))
def _pallas_forward(x, Wp, bp, *, O, use_bf16):
    """x: (E, B, I) unpadded; Wp: (E, I_pad, O_pad) prepared; bp: (E, 1, O_pad)."""
    E, B, I = x.shape
    _, I_pad, O_pad = Wp.shape
    out_dtype = x.dtype
    compute_dtype = jnp.bfloat16 if use_bf16 else x.dtype

    xc = x.astype(compute_dtype)
    sub = _SUBLANE_BF16 if compute_dtype == jnp.bfloat16 else _SUBLANE_F32
    B_pad = _round_up(B, sub)
    if (B_pad, I_pad) != (B, I):
        xc = jnp.pad(xc, ((0, 0), (0, B_pad - B), (0, I_pad - I)))

    x_bytes = np.dtype(compute_dtype).itemsize
    w_bytes = np.dtype(Wp.dtype).itemsize
    o_bytes = np.dtype(out_dtype).itemsize
    need_scratch = out_dtype != jnp.float32

    vmem_cap = _vmem_capacity_bytes()
    vmem_budget = int(0.40 * vmem_cap)

    eb, tb, tk, to = _choose_tiles(E, B_pad, I_pad, O_pad, sub,
                                   x_bytes, w_bytes, o_bytes,
                                   need_scratch, vmem_budget)
    grid = (E // eb, B_pad // tb, O_pad // to, I_pad // tk)

    vmem_est = _step_vmem_bytes(eb, tb, tk, to, x_bytes, w_bytes, o_bytes,
                                need_scratch)
    vmem_limit = int(min(max(int(1.5 * vmem_est), 32 * 1024 * 1024),
                         int(0.80 * vmem_cap)))

    w_streams = B_pad // tb      # W re-read once per B-tile
    x_streams = O_pad // to      # x re-read once per O-tile
    cost = pl.CostEstimate(
        flops=2 * E * B_pad * I_pad * O_pad,
        transcendentals=0,
        bytes_accessed=int(x_streams * E * B_pad * I_pad * x_bytes
                           + w_streams * E * I_pad * O_pad * w_bytes
                           + E * O_pad * 4
                           + E * B_pad * O_pad * o_bytes))

    if need_scratch:
        kernel = _ensemble_linear_kernel_scratch
        scratch_shapes = [pltpu.VMEM((eb, tb, to), jnp.float32)]
    else:
        kernel = _ensemble_linear_kernel_accout
        scratch_shapes = []

    out = pl.pallas_call(
        kernel,
        out_shape=jax.ShapeDtypeStruct((E, B_pad, O_pad), out_dtype),
        grid_spec=pltpu.PrefetchScalarGridSpec(
            num_scalar_prefetch=0,
            grid=grid,
            in_specs=[
                # x tile depends on (member-block, B-tile, K-tile)
                pl.BlockSpec((eb, tb, tk), lambda e, bi, oi, ki: (e, bi, ki)),
                # W tile depends on (member-block, K-tile, O-tile)
                pl.BlockSpec((eb, tk, to), lambda e, bi, oi, ki: (e, ki, oi)),
                # bias tile tied to the O-tile only
                pl.BlockSpec((eb, 1, to), lambda e, bi, oi, ki: (e, 0, oi)),
            ],
            out_specs=pl.BlockSpec((eb, tb, to),
                                   lambda e, bi, oi, ki: (e, bi, oi)),
            scratch_shapes=scratch_shapes,
        ),
        compiler_params=pltpu.CompilerParams(
            dimension_semantics=("parallel", "parallel", "parallel",
                                 "arbitrary"),
            vmem_limit_bytes=vmem_limit,
        ),
        cost_estimate=cost,
    )(xc, Wp, bp)

    if (B_pad, O_pad) != (B, O):
        out = out[:, :B, :O]
    return out


@jax.jit
def _einsum_forward(x, W, b):
    return jnp.einsum("ebi,eio->ebo", x, W) + b


def _prepare_params(W, b, use_bf16):
    """Cast + pad weights ONCE (hoisted out of the per-call forward)."""
    E, I, O = W.shape
    I_pad = _round_up(I, _LANE)
    O_pad = _round_up(O, _LANE)
    Wp = W.astype(jnp.bfloat16 if use_bf16 else W.dtype)
    if (I_pad, O_pad) != (I, O):
        Wp = jnp.pad(Wp, ((0, 0), (0, I_pad - I), (0, O_pad - O)))
    bp = b.astype(jnp.float32).reshape(E, 1, O)
    if O_pad != O:
        bp = jnp.pad(bp, ((0, 0), (0, 0), (0, O_pad - O)))
    return Wp, bp


def _small_problem(E, B, I, O):
    # Below this, padding / per-grid-step overheads dominate: let XLA handle it.
    return (I < _LANE and O < _LANE) or (2 * E * B * I * O < 8_000_000)


def make_parallelized_layer(W, b, *, use_bf16=True, force_pallas=False):
    """Returns forward(x) for the ensemble linear layer, with weight prep hoisted."""
    E, I, O = W.shape
    Wp, bp = _prepare_params(W, b, use_bf16)
    b3 = b.reshape(E, 1, O)

    def forward(x):
        assert x.ndim == 3 and x.shape[0] == E and x.shape[2] == I
        if (not force_pallas) and _small_problem(E, x.shape[1], I, O):
            return _einsum_forward(x, W, b3)          # tiny-problem fast path
        return _pallas_forward(x, Wp, bp, O=O, use_bf16=use_bf16)

    return forward


def init_parallelized_layer(key, ensemble_size, input_dim, output_dim,
                            w_std_value=1.0, b_init_value=0.0):
    # Mirrors: W = fmod(randn(E, I, O), 2) * w_std ; b = zeros(E, 1, O) + b_init
    w = jax.random.normal(key, (ensemble_size, input_dim, output_dim),
                          dtype=jnp.float32)
    W = jnp.fmod(w, 2.0) * w_std_value
    b = jnp.full((ensemble_size, 1, output_dim), b_init_value,
                 dtype=jnp.float32)
    return W, b


if __name__ == "__main__":
    key = jax.random.PRNGKey(0)
    k_w1, k_x1, k_w2, k_x2 = jax.random.split(key, 4)

    # ---- Test 1: small, deliberately unaligned shapes, f32 in/out ----------
    E, B, I, O = 4, 10, 96, 160
    W, b = init_parallelized_layer(k_w1, E, I, O, w_std_value=1.0,
                                   b_init_value=0.1)
    x = jax.random.normal(k_x1, (E, B, I), dtype=jnp.float32)

    layer = make_parallelized_layer(W, b, use_bf16=True, force_pallas=True)
    out = jax.block_until_ready(layer(x))

    xr = x.astype(jnp.bfloat16).astype(jnp.float32)
    Wr = W.astype(jnp.bfloat16).astype(jnp.float32)
    ref = jnp.einsum("ebi,eio->ebo", xr, Wr) + b
    assert out.shape == (E, B, O) and out.dtype == x.dtype
    assert jnp.allclose(out, ref, atol=2e-2, rtol=2e-2), "test 1 mismatch"

    # ---- Test 2: bf16 activations (exercises the f32-scratch kernel) -------
    E2, B2, I2, O2 = 2, 32, 256, 128
    W2, b2 = init_parallelized_layer(k_w2, E2, I2, O2, w_std_value=0.5)
    x2 = jax.random.normal(k_x2, (E2, B2, I2),
                           dtype=jnp.float32).astype(jnp.bfloat16)

    layer2 = make_parallelized_layer(W2, b2, use_bf16=True, force_pallas=True)
    out2 = jax.block_until_ready(layer2(x2))
    ref2 = jnp.einsum("ebi,eio->ebo", x2.astype(jnp.float32),
                      W2.astype(jnp.bfloat16).astype(jnp.float32)) + b2
    assert out2.shape == (E2, B2, O2) and out2.dtype == jnp.bfloat16
    assert jnp.allclose(out2.astype(jnp.float32), ref2,
                        atol=5e-2, rtol=5e-2), "test 2 mismatch"

    # ---- Test 3: tiny problem takes the XLA fast path ----------------------
    layer_fast = make_parallelized_layer(W, b, use_bf16=True)
    out_fast = jax.block_until_ready(layer_fast(x))
    assert out_fast.shape == (E, B, O)

    print("KERNEL_OK")
</pallas_src>

<mosaic_0001>
module attributes {stable_mosaic.version = 11 : i64} {
  func.func @_ensemble_linear_kernel_accout(%arg0: i32, %arg1: i32, %arg2: i32, %arg3: i32, %arg4: memref<2x16x128xbf16, #tpu.memory_space<vmem>>, %arg5: memref<2x128x256xbf16, #tpu.memory_space<vmem>>, %arg6: memref<2x1x256xf32, #tpu.memory_space<vmem>>, %arg7: memref<2x16x256xf32, #tpu.memory_space<vmem>>) attributes {dimension_semantics = [#tpu.dimension_semantics<parallel>, #tpu.dimension_semantics<parallel>, #tpu.dimension_semantics<parallel>, #tpu.dimension_semantics<arbitrary>], iteration_bounds = array<i64: 2, 1, 1, 1>, scalar_prefetch = 0 : i64, scratch_operands = 0 : i64, tpu.core_type = #tpu.core_type<tc>, window_params = [{transform_indices = @transform_0, window_bounds = array<i64: 2, 16, 128>}, {transform_indices = @transform_1, window_bounds = array<i64: 2, 128, 256>}, {transform_indices = @transform_2, window_bounds = array<i64: 2, 1, 256>}, {transform_indices = @transform_3, window_bounds = array<i64: 2, 16, 256>}]} {
    %c0_i32 = arith.constant 0 : i32
    %0 = arith.cmpi eq, %arg3, %c0_i32 : i32
    %1 = arith.extui %0 : i1 to i32
    %c0_i32_0 = arith.constant 0 : i32
    %2 = arith.cmpi ne, %1, %c0_i32_0 : i32
    scf.if %2 {
      %cst_14 = arith.constant 0.000000e+00 : f32
      %12 = vector.broadcast %cst_14 : f32 to vector<2x16x256xf32>
      %c0_15 = arith.constant 0 : index
      %c0_16 = arith.constant 0 : index
      %c0_17 = arith.constant 0 : index
      %13 = vector.load %arg7[%c0_15, %c0_16, %c0_17] : memref<2x16x256xf32, #tpu.memory_space<vmem>>, vector<2x16x256xf32>
      tpu.vector_store %arg7[%c0_15, %c0_16, %c0_17], %12 {strides = array<i32>} : memref<2x16x256xf32, #tpu.memory_space<vmem>>, vector<2x16x256xf32>,
    } else {
    }
    %c0 = arith.constant 0 : index
    %c0_1 = arith.constant 0 : index
    %c0_2 = arith.constant 0 : index
    %3 = vector.load %arg7[%c0, %c0_1, %c0_2] : memref<2x16x256xf32, #tpu.memory_space<vmem>>, vector<2x16x256xf32>
    %c0_3 = arith.constant 0 : index
    %c0_4 = arith.constant 0 : index
    %c0_5 = arith.constant 0 : index
    %4 = vector.load %arg4[%c0_3, %c0_4, %c0_5] : memref<2x16x128xbf16, #tpu.memory_space<vmem>>, vector<2x16x128xbf16>
    %c0_6 = arith.constant 0 : index
    %c0_7 = arith.constant 0 : index
    %c0_8 = arith.constant 0 : index
    %5 = vector.load %arg5[%c0_6, %c0_7, %c0_8] : memref<2x128x256xbf16, #tpu.memory_space<vmem>>, vector<2x128x256xbf16>
    "tpu.trace_start"() <{level = 10 : i32, message = "ebi,eio->ebo"}> : () -> ()
    %cst = arith.constant dense<0.000000e+00> : vector<2x16x256xf32>
    %6 = tpu.matmul %4, %5, %cst {dimension_numbers = #tpu.dot_dimension_numbers<[2], [1], [1], [2], [0, 0, 0, 1, 1, 2], [0], [0]>} : vector<2x16x128xbf16>, vector<2x128x256xbf16>, vector<2x16x256xf32> -> vector<2x16x256xf32>
    "tpu.trace_stop"() : () -> ()
    %7 = arith.addf %3, %6 : vector<2x16x256xf32>
    %c0_9 = arith.constant 0 : index
    %c0_10 = arith.constant 0 : index
    %c0_11 = arith.constant 0 : index
    %8 = vector.load %arg7[%c0_9, %c0_10, %c0_11] : memref<2x16x256xf32, #tpu.memory_space<vmem>>, vector<2x16x256xf32>
    tpu.vector_store %arg7[%c0_9, %c0_10, %c0_11], %7 {strides = array<i32>} : memref<2x16x256xf32, #tpu.memory_space<vmem>>, vector<2x16x256xf32>,
    %c0_i32_12 = arith.constant 0 : i32
    %9 = arith.cmpi eq, %arg3, %c0_i32_12 : i32
    %10 = arith.extui %9 : i1 to i32
    %c0_i32_13 = arith.constant 0 : i32
    %11 = arith.cmpi ne, %10, %c0_i32_13 : i32
    scf.if %11 {
      %c0_14 = arith.constant 0 : index
      %c0_15 = arith.constant 0 : index
      %c0_16 = arith.constant 0 : index
      %12 = vector.load %arg7[%c0_14, %c0_15, %c0_16] : memref<2x16x256xf32, #tpu.memory_space<vmem>>, vector<2x16x256xf32>
      %c0_17 = arith.constant 0 : index
      %c0_18 = arith.constant 0 : index
      %c0_19 = arith.constant 0 : index
      %13 = vector.load %arg6[%c0_17, %c0_18, %c0_19] : memref<2x1x256xf32, #tpu.memory_space<vmem>>, vector<2x1x256xf32>
      %14 = vector.broadcast %13 : vector<2x1x256xf32> to vector<2x16x256xf32>
      %15 = arith.addf %12, %14 : vector<2x16x256xf32>
      %c0_20 = arith.constant 0 : index
      %c0_21 = arith.constant 0 : index
      %c0_22 = arith.constant 0 : index
      %16 = vector.load %arg7[%c0_20, %c0_21, %c0_22] : memref<2x16x256xf32, #tpu.memory_space<vmem>>, vector<2x16x256xf32>
      tpu.vector_store %arg7[%c0_20, %c0_21, %c0_22], %15 {strides = array<i32>} : memref<2x16x256xf32, #tpu.memory_space<vmem>>, vector<2x16x256xf32>,
    } else {
    }
    return
  }
  func.func @transform_0(%arg0: i32, %arg1: i32, %arg2: i32, %arg3: i32) -> (i32, i32, i32) {
    %c0_i32 = arith.constant 0 : i32
    return %arg0, %arg1, %arg3 : i32, i32, i32
  }
  func.func @transform_1(%arg0: i32, %arg1: i32, %arg2: i32, %arg3: i32) -> (i32, i32, i32) {
    %c0_i32 = arith.constant 0 : i32
    return %arg0, %arg3, %arg2 : i32, i32, i32
  }
  func.func @transform_2(%arg0: i32, %arg1: i32, %arg2: i32, %arg3: i32) -> (i32, i32, i32) {
    %c0_i32 = arith.constant 0 : i32
    %c0_i32_0 = arith.constant 0 : i32
    return %arg0, %c0_i32, %arg2 : i32, i32, i32
  }
  func.func @transform_3(%arg0: i32, %arg1: i32, %arg2: i32, %arg3: i32) -> (i32, i32, i32) {
    %c0_i32 = arith.constant 0 : i32
    return %arg0, %arg1, %arg2 : i32, i32, i32
  }
}

</mosaic_0001>

<bundles_post_ra>
// kernel: _pallas_forward.1
= control target key start
LH: loop header
LB: loop body
LE: loop exit
PB: predicated region body
PF: predicated region fallthrough
CT: control target
= control target key end

     0   :  { %8 = vsyncpa [#allocation3], 0  ;;  %s1414_s0 = inlined_call_operand.vmem [shape: bf16[4,16,128], index: 0, kind: input, shape index: {}]   ;;  %s1415_s1 = inlined_call_operand.hbm [shape: bf16[4,128,256], index: 1, kind: input, shape index: {}]   ;;  %s1416_s2 = inlined_call_operand.vmem [shape: f32[4,1,256], index: 2, kind: input, shape index: {}]   ;;  %s1417_s3 = inlined_call_operand.vmem [shape: f32[4,16,256], index: 3, kind: output, shape index: {}]  }
   0x1   :  { %10 = vsyncpa [#allocation3 + $0x1], 0  ;;  %s1206_s12 = smov 0   ;;  %s1208_s13 = smov 0  }
   0x2   :  { %s1210_s14 = smov 0   ;;  %s1212_s15 = smov 0  }
   0x3   :  { %s1214_s16 = smov 0   ;;  %s1216_s17 = smov 0  }
   0x4 LB: > { %s849_s18 = sadd.s32 4294967295, %s1181_s17   ;;  %s42_s19 = sadd.s32 1, %s1177_s16  ;;  %s1181_s17 = sphi %s1216_s17, %s16_s17   ;;  %s1177_s16 = sphi %s1214_s16, %s1425_s16   ;;  %s1173_s15 = sphi %s1212_s15, %s1424_s15   ;;  %s1169_s14 = sphi %s1210_s14, %s1423_s14   ;;  %s1165_s13 = sphi %s1208_s13, %s1422_s13   ;;  %s1161_s12 = sphi %s1206_s12, %s1421_s12  }
   0x5   : > { %p44_p0 = scmp.ge.s32.totalorder %s42_s19, 2  ;;  %s83_s20 = sadd.s32 1, %s1169_s14 }
   0x6   : > { %p90_p1 = scmp.ne.s32.totalorder %s1169_s14, %s1165_s13  ;;  %p91_p2 = scmp.eq.s32.totalorder %s1181_s17, 0 }
   0x7   : > { %s1427_s19 = smov (%p44_p0, %s42_s19), 0  ;;  %p96_p4 = scmp.ne.s32.totalorder %s1165_s13, %s1161_s12 }
   0x8   : > { %p1242_p3 = por %p91_p2, %p90_p1  ;;  %s76_s22 = ssub.s32 %s1177_s16, %s1427_s19 }
   0x9   : > { %p97_p5 = scmp.eq.s32.totalorder %s849_s18, 0  ;;  %p81_p6 = scmp.eq.s32.totalorder %s76_s22, 0 }
   0xa   : > { %p1049_p8 = scmp.lt.s32.totalorder %s1181_s17, 2  ;;  %s196_s25 = sand.u32 1, %s1169_s14  }
   0xb   : > { %p1249_p7 = por %p97_p5, %p96_p4  ;;  %s1006_s26 = sshll.u32 %s1177_s16, 8 }
   0xc   : > { %s1255_s24 = scalar_select %p81_p6, %s1169_s14, %s83_s20  }
   0xd   : > { %s853_s27 = sshll.u32 %s196_s25, 8  ;;  %s211_s30 = scalar_lea.hbm %s1415_s1, %s1006_s26 }
   0xe   : > { %s212_s4 = sshll.u32 %s211_s30, 4  ;;  %s200_s5 = scalar_lea.vmem [#allocation2], %s853_s27  ;;  %s213_s4 = int_to_ptr.hbm [resolvable:$true] %s212_s4 }
   0xf   : > { %s214_s6 = sshll.u32 %s200_s5, 4  ;;  %p1046_p9 = pnand %p1049_p8, %p1242_p3  ;;  %s215_s6 = int_to_ptr.vmem [resolvable:$true] %s214_s6 }
  0x10   : > { %p857_p10 = scmp.ge.s32.totalorder %s1181_s17, 1  ;;  %p236_p11 = scmp.lt.s32.totalorder %s1181_s17, 3 }
  0x11   : > { %s197_s7 = scalar_lea.sflag [#allocation3], %s196_s25  ;;  %s1183_s8 = smov 128  }
  0x12   : > { %s1184_s9 = smov 8   ;;  %p237_p12 = pnand %p857_p10, %p236_p11 }
  0x13   : > { %1048 = dma.hbm_to_vmem [thread:$0]  (!%p1046_p9), %s213_s4, 4096, %s215_s6, %s197_s7, %s1183_s8, %s1183_s8, %s1184_s9  }
  0x14   : > { %240 = sbr.rel (%p237_p12) target bundleno = 209 (0xd1), region = 32  ;;  %s242_s10 = sand.u32 (!%p237_p12), 1, %s1165_s13  }
  0x15   : > { %s858_s11 = sshll.u32 (!%p237_p12), %s242_s10, 8  ;;  %s243_s12 = scalar_lea.sflag (!%p237_p12), [#allocation3], %s242_s10 }
  0x16   : > { %s1267_s18 = scalar_lea.vmem (!%p237_p12), [#allocation2], %s858_s11 }
  0x19   : > { %1156 = dma.done.wait (%p1249_p7), %s243_s12, 4096  }
  0x1a   : > { %1158 = vsyncadd (%p1249_p7), %s243_s12, 4294963200  ;;  %v929_v0 = vld [vmem:[%s1267_s18 + $0x70] sm:$0xf]  ;;  %v1026_v1 = vld [vmem:[%s1267_s18 + $0x74] sm:$0xf0]  ;;  %s859_s20 = sshll.u32 %s1173_s15, 1 }
  0x1b   : > { %v1025_v2 = vld [vmem:[%s1267_s18 + $0x74] sm:$0xf]  ;;  %v930_v3 = vor.u32 %v1026_v1, %v929_v0  ;;  %v931_v4 = vld [vmem:[%s1267_s18 + $0x78] sm:$0xf0]  ;;  %v997_v5 = vld [vmem:[%s1267_s18 + $0xf0] sm:$0xf] }
  0x1c   : > { %v1042_v6 = vld [vmem:[%s1267_s18 + $0xf4] sm:$0xf0]  ;;  %v934_v7 = vor.u32 %v1025_v2, %v931_v4  ;;  %v1041_v9 = vld [vmem:[%s1267_s18 + $0xf4] sm:$0xf]  ;;  %v999_v10 = vld [vmem:[%s1267_s18 + $0xf8] sm:$0xf0] }
  0x1d   : > { %v998_v8 = vor.u32 %v1042_v6, %v997_v5  ;;  %v921_v11 = vld [vmem:[%s1267_s18 + $0x60] sm:$0xf]  ;;  %491 = vmatpush.bf16.msra.mxu0 %v930_v3  ;;  %v1002_v12 = vor.u32 %v1041_v9, %v999_v10  ;;  %v1024_v13 = vld [vmem:[%s1267_s18 + $0x64] sm:$0xf0]  ;;  %v1023_v14 = vld [vmem:[%s1267_s18 + $0x64] sm:$0xf] }
  0x1e   : > { %v923_v15 = vld [vmem:[%s1267_s18 + $0x68] sm:$0xf0]  ;;  %505 = vmatpush.bf16.msra.mxu1 %v934_v7  ;;  %v922_v16 = vor.u32 %v1024_v13, %v921_v11  ;;  %v989_v18 = vld [vmem:[%s1267_s18 + $0xe0] sm:$0xf]  ;;  %v1040_v19 = vld [vmem:[%s1267_s18 + $0xe4] sm:$0xf0] }
  0x1f   : > { %605 = vmatpush.bf16.msra.mxu2 %v998_v8  ;;  %v926_v17 = vor.u32 %v1023_v14, %v923_v15  ;;  %v1039_v20 = vld [vmem:[%s1267_s18 + $0xe4] sm:$0xf]  ;;  %619 = vmatpush.bf16.msra.mxu3 %v1002_v12  ;;  %v990_v21 = vor.u32 %v1040_v19, %v989_v18  ;;  %v991_v22 = vld [vmem:[%s1267_s18 + $0xe8] sm:$0xf0]  ;;  %v913_v23 = vld [vmem:[%s1267_s18 + $0x50] sm:$0xf] }
  0x20   : > { %v1022_v24 = vld [vmem:[%s1267_s18 + $0x54] sm:$0xf0]  ;;  %v994_v25 = vor.u32 %v1039_v20, %v991_v22  ;;  %v1021_v26 = vld [vmem:[%s1267_s18 + $0x54] sm:$0xf]  ;;  %v915_v27 = vld [vmem:[%s1267_s18 + $0x58] sm:$0xf0] }
  0x21   : > { %v981_v28 = vld [vmem:[%s1267_s18 + $0xd0] sm:$0xf]  ;;  %492 = vmatpush.bf16.msra.mxu0 %v922_v16  ;;  %v914_v29 = vor.u32 %v1022_v24, %v913_v23  ;;  %v1038_v30 = vld [vmem:[%s1267_s18 + $0xd4] sm:$0xf0]  ;;  %v1037_v31 = vld [vmem:[%s1267_s18 + $0xd4] sm:$0xf]  ;;  %v918_v33 = vor.u32 %v1021_v26, %v915_v27 }
  0x22   : > { %v983_v32 = vld [vmem:[%s1267_s18 + $0xd8] sm:$0xf0]  ;;  %506 = vmatpush.bf16.msra.mxu1 %v926_v17  ;;  %v982_v34 = vor.u32 %v1038_v30, %v981_v28  ;;  %v905_v35 = vld [vmem:[%s1267_s18 + $0x40] sm:$0xf]  ;;  %v1020_v36 = vld [vmem:[%s1267_s18 + $0x44] sm:$0xf0] }
  0x23   : > { %606 = vmatpush.bf16.msra.mxu2 %v990_v21  ;;  %v1019_v37 = vld [vmem:[%s1267_s18 + $0x44] sm:$0xf]  ;;  %620 = vmatpush.bf16.msra.mxu3 %v994_v25  ;;  %v986_v38 = vor.u32 %v1037_v31, %v983_v32  ;;  %v907_v39 = vld [vmem:[%s1267_s18 + $0x48] sm:$0xf0]  ;;  %v973_v40 = vld [vmem:[%s1267_s18 + $0xc0] sm:$0xf]  ;;  %v906_v44 = vor.u32 %v1020_v36, %v905_v35 }
  0x24   : > { %v1036_v41 = vld [vmem:[%s1267_s18 + $0xc4] sm:$0xf0]  ;;  %v1035_v42 = vld [vmem:[%s1267_s18 + $0xc4] sm:$0xf]  ;;  %v975_v43 = vld [vmem:[%s1267_s18 + $0xc8] sm:$0xf0]  ;;  %v910_v45 = vor.u32 %v1019_v37, %v907_v39 }
  0x25   : > { %493 = vmatpush.bf16.msra.mxu0 %v914_v29  ;;  %v974_v46 = vor.u32 %v1036_v41, %v973_v40  ;;  %v897_v47 = vld [vmem:[%s1267_s18 + $0x30] sm:$0xf]  ;;  %v1018_v48 = vld [vmem:[%s1267_s18 + $0x34] sm:$0xf0]  ;;  %v1017_v49 = vld [vmem:[%s1267_s18 + $0x34] sm:$0xf]  ;;  %v978_v50 = vor.u32 %v1035_v42, %v975_v43 }
  0x26   : > { %507 = vmatpush.bf16.msra.mxu1 %v918_v33  ;;  %v899_v51 = vld [vmem:[%s1267_s18 + $0x38] sm:$0xf0]  ;;  %v965_v52 = vld [vmem:[%s1267_s18 + $0xb0] sm:$0xf]  ;;  %v1034_v53 = vld [vmem:[%s1267_s18 + $0xb4] sm:$0xf0]  ;;  %v898_v56 = vor.u32 %v1018_v48, %v897_v47 }
  0x27   : > { %607 = vmatpush.bf16.msra.mxu2 %v982_v34  ;;  %621 = vmatpush.bf16.msra.mxu3 %v986_v38  ;;  %v1033_v54 = vld [vmem:[%s1267_s18 + $0xb4] sm:$0xf]  ;;  %v967_v55 = vld [vmem:[%s1267_s18 + $0xb8] sm:$0xf0]  ;;  %p1316_p13 = scmp.lt.s32.totalorder %s859_s20, 3  ;;  %v902_v57 = vor.u32 %v1017_v49, %v899_v51  ;;  %v966_v58 = vor.u32 %v1034_v53, %v965_v52  ;;  %v1185_v19 = vmov 0.0  }
  0x28   : > { %v889_v59 = vld [vmem:[%s1267_s18 + $0x20] sm:$0xf]  ;;  %v1016_v60 = vld [vmem:[%s1267_s18 + $0x24] sm:$0xf0]  ;;  %v1015_v61 = vld [vmem:[%s1267_s18 + $0x24] sm:$0xf]  ;;  %v970_v62 = vor.u32 %v1033_v54, %v967_v55 }
  0x29   : > { %494 = vmatpush.bf16.msra.mxu0 %v906_v44  ;;  %v891_v63 = vld [vmem:[%s1267_s18 + $0x28] sm:$0xf0]  ;;  %v957_v0 = vld [vmem:[%s1267_s18 + $0xa0] sm:$0xf]  ;;  %v1032_v1 = vld [vmem:[%s1267_s18 + $0xa4] sm:$0xf0]  ;;  %v890_v4 = vor.u32 %v1016_v60, %v889_v59 }
  0x2a   : > { %508 = vmatpush.bf16.msra.mxu1 %v910_v45  ;;  %v1031_v2 = vld [vmem:[%s1267_s18 + $0xa4] sm:$0xf]  ;;  %v959_v3 = vld [vmem:[%s1267_s18 + $0xa8] sm:$0xf0]  ;;  %v881_v5 = vld [vmem:[%s1267_s18 + $0x10] sm:$0xf]  ;;  %v894_v6 = vor.u32 %v1015_v61, %v891_v63  ;;  %v958_v7 = vor.u32 %v1032_v1, %v957_v0 }
  0x2b   : > { %608 = vmatpush.bf16.msra.mxu2 %v974_v46  ;;  %622 = vmatpush.bf16.msra.mxu3 %v978_v50  ;;  %s1429_s20 = smov (!%p1316_p13, %s859_s20), 3  ;;  %v1014_v8 = vld [vmem:[%s1267_s18 + $0x14] sm:$0xf0]  ;;  %v1013_v9 = vld [vmem:[%s1267_s18 + $0x14] sm:$0xf]  ;;  %v962_v11 = vor.u32 %v1031_v2, %v959_v3 }
  0x2c   : > { %v883_v10 = vld [vmem:[%s1267_s18 + $0x18] sm:$0xf0]  ;;  %v949_v12 = vld [vmem:[%s1267_s18 + $0x90] sm:$0xf]  ;;  %v1030_v13 = vld [vmem:[%s1267_s18 + $0x94] sm:$0xf0]  ;;  %v882_v16 = vor.u32 %v1014_v8, %v881_v5 }
  0x2d   : > { %495 = vmatpush.bf16.msra.mxu0 %v898_v56  ;;  %s1008_s15 = sshll.u32 %s1429_s20, 5  ;;  %v1029_v14 = vld [vmem:[%s1267_s18 + $0x94] sm:$0xf]  ;;  %v951_v15 = vld [vmem:[%s1267_s18 + $0x98] sm:$0xf0]  ;;  %v886_v20 = vor.u32 %v1013_v9, %v883_v10  ;;  %v950_v21 = vor.u32 %v1030_v13, %v949_v12  ;;  %s1007_s26 = sshll.u32 %s1429_s20, 3 }
  0x2e   : > { %509 = vmatpush.bf16.msra.mxu1 %v902_v57  ;;  %s1346_s25 = scalar_lea.vmem %s1417_s3, %s1008_s15  ;;  %v873_v17 = vld [vmem:[%s1267_s18] sm:$0xf]  ;;  %v1012_v18 = vld [vmem:[%s1267_s18 + $0x4] sm:$0xf0]  ;;  %v1011_v22 = vld [vmem:[%s1267_s18 + $0x4] sm:$0xf]  ;;  %v954_v24 = vor.u32 %v1029_v14, %v951_v15  ;;  %s314_s29 = scalar_lea.vmem %s1414_s0, %s1007_s26 }
  0x2f   : > { %609 = vmatpush.bf16.msra.mxu2 %v966_v58  ;;  %623 = vmatpush.bf16.msra.mxu3 %v970_v62  ;;  %353 = vst [vmem:[%s1346_s25] sm:$0xff] %v1185_v19  ;;  %v875_v23 = vld [vmem:[%s1267_s18 + $0x8] sm:$0xf0]  ;;  %v941_v25 = vld [vmem:[%s1267_s18 + $0x80] sm:$0xf]  ;;  %v1028_v26 = vld [vmem:[%s1267_s18 + $0x84] sm:$0xf0]  ;;  %v874_v29 = vor.u32 %v1012_v18, %v873_v17 }
  0x30   : > { %357 = vst [vmem:[%s1346_s25 + $0x20] sm:$0xff] %v1185_v19  ;;  %v1027_v27 = vld [vmem:[%s1267_s18 + $0x84] sm:$0xf]  ;;  %v943_v28 = vld [vmem:[%s1267_s18 + $0x88] sm:$0xf0]  ;;  %v878_v30 = vor.u32 %v1011_v22, %v875_v23  ;;  %v942_v31 = vor.u32 %v1028_v26, %v941_v25  ;;  %s863_s30 = sshll.u32 %s1429_s20, 1 }
  0x31   : > { %496 = vmatpush.bf16.msra.mxu0 %v890_v4  ;;  %354 = vst [vmem:[%s1346_s25 + $0x8] sm:$0xff] %v1185_v19  ;;  %v946_v32 = vor.u32 %v1027_v27, %v943_v28  ;;  %v1009_v33 = vld [vmem:[%s314_s29] sm:$0xff]  ;;  %v1010_v34 = vld [vmem:[%s314_s29 + $0x8] sm:$0xff]  ;;  %s328_s6 = scalar_lea.vmem %s1416_s2, %s863_s30 }
  0x32   : > { %510 = vmatpush.bf16.msra.mxu1 %v894_v6  ;;  %355 = vst [vmem:[%s1346_s25 + $0x10] sm:$0xff] %v1185_v19  ;;  %v660_v49 = vld [vmem:[%s328_s6] sm:$0x3]  ;;  %v661_v50 = vld [vmem:[%s328_s6 + $0x2] sm:$0x3] }
  0x33   : > { %610 = vmatpush.bf16.msra.mxu2 %v958_v7  ;;  %624 = vmatpush.bf16.msra.mxu3 %v962_v11  ;;  %356 = vst [vmem:[%s1346_s25 + $0x18] sm:$0xff] %v1185_v19  ;;  %v664_v51 = vperm.slane %v660_v49, 0  ;;  %v665_v52 = vperm.slane %v660_v49, 1  ;;  %v666_v53 = vperm.slane %v661_v50, 0  ;;  %v667_v56 = vperm.slane %v661_v50, 1 }
  0x34   : > { %358 = vst [vmem:[%s1346_s25 + $0x28] sm:$0xff] %v1185_v19 }
  0x35   : > { %497 = vmatpush.bf16.msra.mxu0 %v882_v16  ;;  %359 = vst [vmem:[%s1346_s25 + $0x30] sm:$0xff] %v1185_v19 }
  0x36   : > { %511 = vmatpush.bf16.msra.mxu1 %v886_v20  ;;  %360 = vst [vmem:[%s1346_s25 + $0x38] sm:$0xff] %v1185_v19  ;;  %v361_v35 = vld [vmem:[%s1346_s25] sm:$0xff] }
  0x37   : > { %611 = vmatpush.bf16.msra.mxu2 %v950_v21  ;;  %625 = vmatpush.bf16.msra.mxu3 %v954_v24 }
  0x38   : > { %v362_v36 = vld [vmem:[%s1346_s25 + $0x8] sm:$0xff] }
  0x39   : > { %498 = vmatpush.bf16.msra.mxu0 %v874_v29  ;;  %v363_v41 = vld [vmem:[%s1346_s25 + $0x10] sm:$0xff] }
  0x3a   : > { %512 = vmatpush.bf16.msra.mxu1 %v878_v30  ;;  %v364_v43 = vld [vmem:[%s1346_s25 + $0x18] sm:$0xff] }
  0x3b   : > { %612 = vmatpush.bf16.msra.mxu2 %v942_v31  ;;  %626 = vmatpush.bf16.msra.mxu3 %v946_v32 }
  0x3c   : > { %499 = vmatmul.bf16.vlgmr.msra.gmra.mxu0 %v1009_v33 }
  0x3d   : > { %513 = vmatmul.bf16.vlgmr.msra.gmra.mxu1 %v1009_v33 }
  0x3e   : > { %613 = vmatmul.bf16.vlgmr.msra.gmra.mxu2 %v1010_v34  ;;  %627 = vmatmul.bf16.vlgmr.msra.gmra.mxu3 %v1010_v34 }
  0xb9   : > { %v500_v37 = vpop.f32.mrf.mxu0 }
  0xba   : > { %v633_v38 = vadd.f32 %v500_v37, %v361_v35  ;;  %v514_v39 = vpop.f32.mrf.mxu1 }
  0xbb   : > { %v634_v40 = vadd.f32 %v514_v39, %v362_v36 }
  0xbc   : > { %641 = vst [vmem:[%s1346_s25] sm:$0xff] %v633_v38 }
  0xbd   : > { %642 = vst [vmem:[%s1346_s25 + $0x8] sm:$0xff] %v634_v40 }
  0xc1   : > { %v614_v42 = vpop.f32.mrf.mxu2  ;;  %v628_v44 = vpop.f32.mrf.mxu3 }
  0xc2   : > { %v502_v45 = vpop.f32.mrf.mxu0  ;;  %v516_v47 = vpop.f32.mrf.mxu1  ;;  %645 = vst [vmem:[%s1346_s25 + $0x20] sm:$0xff] %v614_v42  ;;  %v676_v60 = vadd.f32 %v666_v53, %v614_v42  ;;  %v677_v62 = vadd.f32 %v667_v56, %v628_v44 }
  0xc3   : > { %v635_v46 = vadd.f32 %v502_v45, %v363_v41  ;;  %v636_v48 = vadd.f32 %v516_v47, %v364_v43  ;;  %646 = vst [vmem:[%s1346_s25 + $0x28] sm:$0xff] %v628_v44  ;;  %v652_v57 = vld [vmem:[%s1346_s25] sm:$0xff] }
  0xc4   : > { %v672_v58 = vadd.f32 %v664_v51, %v652_v57  ;;  %v653_v59 = vld [vmem:[%s1346_s25 + $0x8] sm:$0xff]  ;;  %684 = vst [vmem:[%s1346_s25 + $0x20] sm:$0xff] %v676_v60 }
  0xc5   : > { %643 = vst [vmem:[%s1346_s25 + $0x10] sm:$0xff] %v635_v46  ;;  %v673_v61 = vadd.f32 %v665_v52, %v653_v59 }
  0xc6   : > { %644 = vst [vmem:[%s1346_s25 + $0x18] sm:$0xff] %v636_v48 }
  0xc7   : > { %680 = vst [vmem:[%s1346_s25] sm:$0xff] %v672_v58 }
  0xc8   : > { %681 = vst [vmem:[%s1346_s25 + $0x8] sm:$0xff] %v673_v61 }
  0xc9   : > { %v616_v54 = vpop.f32.mrf.mxu2  ;;  %v630_v55 = vpop.f32.mrf.mxu3  ;;  %685 = vst [vmem:[%s1346_s25 + $0x28] sm:$0xff] %v677_v62 }
  0xca   : > { %647 = vst [vmem:[%s1346_s25 + $0x30] sm:$0xff] %v616_v54  ;;  %v678_v2 = vadd.f32 %v666_v53, %v616_v54  ;;  %v679_v4 = vadd.f32 %v667_v56, %v630_v55 }
  0xcb   : > { %648 = vst [vmem:[%s1346_s25 + $0x38] sm:$0xff] %v630_v55 }
  0xcc   : > { %v654_v63 = vld [vmem:[%s1346_s25 + $0x10] sm:$0xff]  ;;  %686 = vst [vmem:[%s1346_s25 + $0x30] sm:$0xff] %v678_v2 }
  0xcd   : > { %v674_v0 = vadd.f32 %v664_v51, %v654_v63  ;;  %v655_v1 = vld [vmem:[%s1346_s25 + $0x18] sm:$0xff]  ;;  %687 = vst [vmem:[%s1346_s25 + $0x38] sm:$0xff] %v679_v4 }
  0xce   : > { %v675_v3 = vadd.f32 %v665_v52, %v655_v1 }
  0xcf   : > { %682 = vst [vmem:[%s1346_s25 + $0x10] sm:$0xff] %v674_v0 }
  0xd0   : > { %683 = vst [vmem:[%s1346_s25 + $0x18] sm:$0xff] %v675_v3 }
  0xd1 PF: > { %s16_s17 = sadd.s32 1, %s1181_s17   ;;  %s1421_s12 = smov %s1165_s13 }
  0xd2   : > { %p13_p0 = scmp.ge.s32.totalorder %s16_s17, 4   ;;  %s1422_s13 = smov %s1169_s14 }
  0xd3   : > { %s1423_s14 = smov %s1255_s24  ;;  %s1424_s15 = smov %s1177_s16 }
  0xd4   : > { %s1425_s16 = smov %s1427_s19  ;;  %15 = sbr.rel (!%p13_p0) target bundleno = 4 (0x4), region = 86 }
  0xd9   :  { %732 = vsyncpa [#allocation3], 1 }
  0xda   :  { %734 = vsyncpa [#allocation3 + $0x1], 1 }

</bundles_post_ra>
